<compile_context>
chip_gen: v7x
topology: tpu7x:2x2x1
jax: 0.10.0
libtpu: 0.0.40
codegen_flags: <defaults>
</compile_context>

<pallas_src>
import jax
import jax.numpy as jnp
from jax.experimental import pallas as pl
from jax.experimental.pallas import tpu as pltpu


def _actor_gru_kernel(x_ref, h0_ref, wx0_ref, wxr_ref, wh_ref, b4_ref,
                      wa_ref, ba_ref, grout_ref, h_out_ref, probs_ref):
    # Shapes (per batch tile TB):
    #   x_ref:     (S, TB, IN)        h0_ref: (L, TB, H)
    #   wx0_ref:   (IN, 4H)           wxr_ref: (max(L-1,1), H, 4H)
    #   wh_ref:    (L, H, 4H)         b4_ref:  (L, 1, 4H)
    #   wa_ref:    (H, A)             ba_ref:  (1, A)
    #   grout_ref: (S, TB, H)   h_out_ref: (L, TB, H)   probs_ref: (S, TB, A)
    S = x_ref.shape[0]
    L = h0_ref.shape[0]
    H = h0_ref.shape[2]

    # Tiny, grid-constant parameters: load once (resident across grid steps).
    wx0 = wx0_ref[...]
    wa = wa_ref[...]
    ba = ba_ref[...]

    # Per-layer hidden state carried through the (static) sequence loop.
    h = [h0_ref[l] for l in range(L)]

    for s in range(S):
        layer_in = x_ref[s]                                     # (TB, in_l)
        for l in range(L):
            wx = wx0 if l == 0 else wxr_ref[l - 1]              # (in_l, 4H)
            # Packed gate pre-activations:
            #   g[:,   :2H] = (x@Wih + h@Whh + b_ih + b_hh)[r, z]
            #   g[:, 2H:3H] = x@Wih_n + b_ih_n
            #   g[:, 3H:4H] = h@Whh_n + b_hh_n
            g = (jnp.dot(layer_in, wx, preferred_element_type=jnp.float32)
                 + jnp.dot(h[l], wh_ref[l], preferred_element_type=jnp.float32)
                 + b4_ref[l])
            rz = jax.nn.sigmoid(g[:, 0:2 * H])
            r = rz[:, 0:H]
            z = rz[:, H:2 * H]
            n = jnp.tanh(g[:, 2 * H:3 * H] + r * g[:, 3 * H:4 * H])
            h_new = n + z * (h[l] - n)                          # (1-z)*n + z*h
            h[l] = h_new
            layer_in = h_new

        grout_ref[s] = layer_in.astype(grout_ref.dtype)

        # Actor head: Linear(H -> A) + Softmax(dim=-1).
        logits = jnp.dot(layer_in, wa,
                         preferred_element_type=jnp.float32) + ba
        m = jnp.max(logits, axis=-1, keepdims=True)
        e = jnp.exp(logits - m)
        probs = e / jnp.sum(e, axis=-1, keepdims=True)
        probs_ref[s] = probs.astype(probs_ref.dtype)

    for l in range(L):
        h_out_ref[l] = h[l].astype(h_out_ref.dtype)


def _pack_layer(w_ih, w_hh, b_ih, b_hh, H):
    """Pack a PyTorch-layout GRU layer into the kernel's 4H-column layout."""
    wih_t = w_ih.T                                   # (in_l, 3H)
    whh_t = w_hh.T                                   # (H, 3H)
    in_l = wih_t.shape[0]
    wx4 = jnp.concatenate(
        [wih_t[:, :2 * H], wih_t[:, 2 * H:], jnp.zeros((in_l, H), jnp.float32)],
        axis=1)                                      # (in_l, 4H)
    wh4 = jnp.concatenate(
        [whh_t[:, :2 * H], jnp.zeros((H, H), jnp.float32), whh_t[:, 2 * H:]],
        axis=1)                                      # (H, 4H)
    b4 = jnp.concatenate(
        [b_ih[:2 * H] + b_hh[:2 * H], b_ih[2 * H:], b_hh[2 * H:]]
    ).reshape(1, 4 * H)                              # (1, 4H)
    return wx4, wh4, b4


def actor_gru_net_forward(x, hidden, params, *, max_tile_b=4096):
    """Pallas implementation of ActorGRUNet.forward.

    Args:
      x:      (S, B, input_dims) float32   (seq-major, like nn.GRU default)
      hidden: (L, B, 16) float32
      params: dict with PyTorch-layout parameters:
        w_ih[l]: (3H, in_l), w_hh[l]: (3H, H), b_ih[l]/b_hh[l]: (3H,)
        actor_w: (A, H), actor_b: (A,)
    Returns:
      (probs, h, grout)   -- probs are the Categorical parameters.
      If S == 1 probs/grout are squeezed on axis 0 (matches grout.squeeze(0)).
    """
    S, B, IN = x.shape
    L, B2, H = hidden.shape
    assert B2 == B
    A = params["actor_w"].shape[0]
    H4 = 4 * H

    # Host-side re-packing into the fused 4H-column gate layout.
    packed = [_pack_layer(params["w_ih"][l], params["w_hh"][l],
                          params["b_ih"][l], params["b_hh"][l], H)
              for l in range(L)]
    wx0 = packed[0][0]                                          # (IN, 4H)
    if L > 1:
        wxr = jnp.stack([packed[l][0] for l in range(1, L)])    # (L-1, H, 4H)
    else:
        wxr = jnp.zeros((1, H, H4), jnp.float32)                # dummy (unused)
    wh = jnp.stack([packed[l][1] for l in range(L)])            # (L, H, 4H)
    b4 = jnp.stack([packed[l][2] for l in range(L)])            # (L, 1, 4H)
    wa = params["actor_w"].T                                    # (H, A)
    ba = params["actor_b"].reshape(1, A)
    Lr = wxr.shape[0]

    # Batch tile: whole batch if it is small, else a large multiple-of-8 tile
    # so double-buffering overlaps HBM reads with compute.  Per-tile VMEM
    # (2 bufs x (x + h + 3 outputs)) is ~0.75 KiB/row -> a 4096-row tile stays
    # well under the 16 MiB v5e / 32 MiB v6e+v7x scoped-VMEM defaults.
    TB = B if B <= max_tile_b else max_tile_b
    grid = (pl.cdiv(B, TB),)

    # Advisory cost estimate (tiny / mem-bound) for XLA's scheduler.
    flops_per_row = 0
    for l in range(L):
        in_l = IN if l == 0 else H
        flops_per_row += 2 * (in_l + H) * H4 + 12 * H
    flops_per_row += 2 * H * A + 4 * A
    flops = int(S * B * flops_per_row)
    trans = int(S * B * (3 * H * L + A))
    bytes_in = 4 * int(x.size + hidden.size + wx0.size + wxr.size +
                       wh.size + b4.size + wa.size + ba.size)
    bytes_out = 4 * int(S * B * H + L * B * H + S * B * A)
    cost = pl.CostEstimate(flops=flops, transcendentals=trans,
                           bytes_accessed=bytes_in + bytes_out)

    grout, h_out, probs = pl.pallas_call(
        _actor_gru_kernel,
        out_shape=(
            jax.ShapeDtypeStruct((S, B, H), jnp.float32),
            jax.ShapeDtypeStruct((L, B, H), jnp.float32),
            jax.ShapeDtypeStruct((S, B, A), jnp.float32),
        ),
        grid=grid,
        in_specs=[
            pl.BlockSpec((S, TB, IN), lambda i: (0, i, 0)),
            pl.BlockSpec((L, TB, H), lambda i: (0, i, 0)),
            pl.BlockSpec((IN, H4), lambda i: (0, 0)),
            pl.BlockSpec((Lr, H, H4), lambda i: (0, 0, 0)),
            pl.BlockSpec((L, H, H4), lambda i: (0, 0, 0)),
            pl.BlockSpec((L, 1, H4), lambda i: (0, 0, 0)),
            pl.BlockSpec((H, A), lambda i: (0, 0)),
            pl.BlockSpec((1, A), lambda i: (0, 0)),
        ],
        out_specs=[
            pl.BlockSpec((S, TB, H), lambda i: (0, i, 0)),
            pl.BlockSpec((L, TB, H), lambda i: (0, i, 0)),
            pl.BlockSpec((S, TB, A), lambda i: (0, i, 0)),
        ],
        compiler_params=pltpu.CompilerParams(
            dimension_semantics=("parallel",),   # batch tiles split across TCs on v7x
        ),
        cost_estimate=cost,
    )(x, hidden, wx0, wxr, wh, b4, wa, ba)

    if S == 1:  # mirrors grout.squeeze(0) in the PyTorch forward
        return probs[0], h_out, grout[0]
    return probs, h_out, grout


def init_params(key, input_dims, n_actions, nlayers=2, hidden=16):
    """PyTorch-style init: GRU params ~ U(-1/sqrt(H), 1/sqrt(H)),
    Linear ~ U(-1/sqrt(in_features), 1/sqrt(in_features))."""
    keys = jax.random.split(key, 4 * nlayers + 2)
    bound_g = 1.0 / float(jnp.sqrt(jnp.float32(hidden)))
    w_ih, w_hh, b_ih, b_hh = [], [], [], []
    ki = 0
    for l in range(nlayers):
        in_l = input_dims if l == 0 else hidden
        w_ih.append(jax.random.uniform(keys[ki], (3 * hidden, in_l),
                                       jnp.float32, -bound_g, bound_g)); ki += 1
        w_hh.append(jax.random.uniform(keys[ki], (3 * hidden, hidden),
                                       jnp.float32, -bound_g, bound_g)); ki += 1
        b_ih.append(jax.random.uniform(keys[ki], (3 * hidden,),
                                       jnp.float32, -bound_g, bound_g)); ki += 1
        b_hh.append(jax.random.uniform(keys[ki], (3 * hidden,),
                                       jnp.float32, -bound_g, bound_g)); ki += 1
    bound_a = 1.0 / float(jnp.sqrt(jnp.float32(hidden)))
    actor_w = jax.random.uniform(keys[ki], (n_actions, hidden),
                                 jnp.float32, -bound_a, bound_a); ki += 1
    actor_b = jax.random.uniform(keys[ki], (n_actions,),
                                 jnp.float32, -bound_a, bound_a)
    return dict(w_ih=w_ih, w_hh=w_hh, b_ih=b_ih, b_hh=b_hh,
                actor_w=actor_w, actor_b=actor_b)


def ref_forward(x, h0, params):
    """Pure-JAX reference (same math as torch nn.GRU + Linear + Softmax)."""
    S, B, IN = x.shape
    L, _, H = h0.shape
    h = [h0[l] for l in range(L)]
    grout_steps = []
    for s in range(S):
        inp = x[s]
        for l in range(L):
            gi = inp @ params["w_ih"][l].T + params["b_ih"][l]
            gh = h[l] @ params["w_hh"][l].T + params["b_hh"][l]
            i_r, i_z, i_n = jnp.split(gi, 3, axis=-1)
            h_r, h_z, h_n = jnp.split(gh, 3, axis=-1)
            r = jax.nn.sigmoid(i_r + h_r)
            z = jax.nn.sigmoid(i_z + h_z)
            n = jnp.tanh(i_n + r * h_n)
            h_new = (1.0 - z) * n + z * h[l]
            h[l] = h_new
            inp = h_new
        grout_steps.append(inp)
    grout = jnp.stack(grout_steps)                     # (S, B, H)
    h_out = jnp.stack(h)                               # (L, B, H)
    logits = grout @ params["actor_w"].T + params["actor_b"]
    probs = jax.nn.softmax(logits, axis=-1)            # (S, B, A)
    return probs, h_out, grout


if __name__ == "__main__":
    key = jax.random.PRNGKey(0)
    k_x, k_h, k_p = jax.random.split(key, 3)

    S, B = 1, 8                    # single recurrent step (PPO usage), small batch
    INPUT_DIMS, N_ACTIONS, NLAYERS, HIDDEN = 8, 4, 2, 16

    x = jax.random.normal(k_x, (S, B, INPUT_DIMS), jnp.float32)
    h0 = jax.random.normal(k_h, (NLAYERS, B, HIDDEN), jnp.float32)
    params = init_params(k_p, INPUT_DIMS, N_ACTIONS, NLAYERS, HIDDEN)

    probs, h, grout = actor_gru_net_forward(x, h0, params)
    probs, h, grout = jax.block_until_ready((probs, h, grout))

    probs_r, h_r, grout_r = ref_forward(x, h0, params)
    probs_r = probs_r[0]           # squeeze(0), S == 1
    grout_r = grout_r[0]

    assert probs.shape == (B, N_ACTIONS)
    assert h.shape == (NLAYERS, B, HIDDEN)
    assert grout.shape == (B, HIDDEN)
    assert jnp.allclose(probs, probs_r, atol=1e-4, rtol=1e-4)
    assert jnp.allclose(h, h_r, atol=1e-4, rtol=1e-4)
    assert jnp.allclose(grout, grout_r, atol=1e-4, rtol=1e-4)

    print("KERNEL_OK")
</pallas_src>

<mosaic_0001>
module attributes {stable_mosaic.version = 11 : i64} {
  func.func @_actor_gru_kernel(%arg0: i32, %arg1: memref<1x8x8xf32, #tpu.memory_space<vmem>>, %arg2: memref<2x8x16xf32, #tpu.memory_space<vmem>>, %arg3: memref<8x64xf32, #tpu.memory_space<vmem>>, %arg4: memref<1x16x64xf32, #tpu.memory_space<vmem>>, %arg5: memref<2x16x64xf32, #tpu.memory_space<vmem>>, %arg6: memref<2x1x64xf32, #tpu.memory_space<vmem>>, %arg7: memref<16x4xf32, #tpu.memory_space<vmem>>, %arg8: memref<1x4xf32, #tpu.memory_space<vmem>>, %arg9: memref<1x8x16xf32, #tpu.memory_space<vmem>>, %arg10: memref<2x8x16xf32, #tpu.memory_space<vmem>>, %arg11: memref<1x8x4xf32, #tpu.memory_space<vmem>>) attributes {dimension_semantics = [#tpu.dimension_semantics<parallel>], iteration_bounds = array<i64: 1>, scalar_prefetch = 0 : i64, scratch_operands = 0 : i64, tpu.core_type = #tpu.core_type<tc>, window_params = [{transform_indices = @transform_0, window_bounds = array<i64: 1, 8, 8>}, {transform_indices = @transform_1, window_bounds = array<i64: 2, 8, 16>}, {pipeline_mode = #tpu.pipeline_mode<synchronous>, transform_indices = @transform_2, window_bounds = array<i64: 8, 64>}, {pipeline_mode = #tpu.pipeline_mode<synchronous>, transform_indices = @transform_3, window_bounds = array<i64: 1, 16, 64>}, {pipeline_mode = #tpu.pipeline_mode<synchronous>, transform_indices = @transform_4, window_bounds = array<i64: 2, 16, 64>}, {pipeline_mode = #tpu.pipeline_mode<synchronous>, transform_indices = @transform_5, window_bounds = array<i64: 2, 1, 64>}, {pipeline_mode = #tpu.pipeline_mode<synchronous>, transform_indices = @transform_6, window_bounds = array<i64: 16, 4>}, {pipeline_mode = #tpu.pipeline_mode<synchronous>, transform_indices = @transform_7, window_bounds = array<i64: 1, 4>}, {transform_indices = @transform_8, window_bounds = array<i64: 1, 8, 16>}, {transform_indices = @transform_9, window_bounds = array<i64: 2, 8, 16>}, {transform_indices = @transform_10, window_bounds = array<i64: 1, 8, 4>}]} {
    %c0 = arith.constant 0 : index
    %c0_0 = arith.constant 0 : index
    %0 = vector.load %arg3[%c0, %c0_0] : memref<8x64xf32, #tpu.memory_space<vmem>>, vector<8x64xf32>
    %c0_1 = arith.constant 0 : index
    %c0_2 = arith.constant 0 : index
    %1 = vector.load %arg7[%c0_1, %c0_2] : memref<16x4xf32, #tpu.memory_space<vmem>>, vector<16x4xf32>
    %c0_3 = arith.constant 0 : index
    %c0_4 = arith.constant 0 : index
    %2 = vector.load %arg8[%c0_3, %c0_4] : memref<1x4xf32, #tpu.memory_space<vmem>>, vector<1x4xf32>
    %c0_5 = arith.constant 0 : index
    %c0_6 = arith.constant 0 : index
    %c0_7 = arith.constant 0 : index
    %3 = vector.load %arg2[%c0_5, %c0_6, %c0_7] : memref<2x8x16xf32, #tpu.memory_space<vmem>>, vector<1x8x16xf32>
    %4 = vector.shape_cast %3 : vector<1x8x16xf32> to vector<8x16xf32>
    %c1 = arith.constant 1 : index
    %c0_8 = arith.constant 0 : index
    %c0_9 = arith.constant 0 : index
    %5 = vector.load %arg2[%c1, %c0_8, %c0_9] : memref<2x8x16xf32, #tpu.memory_space<vmem>>, vector<1x8x16xf32>
    %6 = vector.shape_cast %5 : vector<1x8x16xf32> to vector<8x16xf32>
    %c0_10 = arith.constant 0 : index
    %c0_11 = arith.constant 0 : index
    %c0_12 = arith.constant 0 : index
    %7 = vector.load %arg1[%c0_10, %c0_11, %c0_12] : memref<1x8x8xf32, #tpu.memory_space<vmem>>, vector<1x8x8xf32>
    %8 = vector.shape_cast %7 : vector<1x8x8xf32> to vector<8x8xf32>
    %cst = arith.constant dense<0.000000e+00> : vector<8x64xf32>
    %9 = tpu.matmul %8, %0, %cst {dimension_numbers = #tpu.dot_dimension_numbers<[1], [0], [0], [1], [0, 0, 1, 1], [], []>} : vector<8x8xf32>, vector<8x64xf32>, vector<8x64xf32> -> vector<8x64xf32>
    %c0_13 = arith.constant 0 : index
    %c0_14 = arith.constant 0 : index
    %c0_15 = arith.constant 0 : index
    %10 = vector.load %arg5[%c0_13, %c0_14, %c0_15] : memref<2x16x64xf32, #tpu.memory_space<vmem>>, vector<1x16x64xf32>
    %11 = vector.shape_cast %10 : vector<1x16x64xf32> to vector<16x64xf32>
    %cst_16 = arith.constant dense<0.000000e+00> : vector<8x64xf32>
    %12 = tpu.matmul %4, %11, %cst_16 {dimension_numbers = #tpu.dot_dimension_numbers<[1], [0], [0], [1], [0, 0, 1, 1], [], []>} : vector<8x16xf32>, vector<16x64xf32>, vector<8x64xf32> -> vector<8x64xf32>
    %13 = arith.addf %9, %12 : vector<8x64xf32>
    %c0_17 = arith.constant 0 : index
    %c0_18 = arith.constant 0 : index
    %c0_19 = arith.constant 0 : index
    %14 = vector.load %arg6[%c0_17, %c0_18, %c0_19] : memref<2x1x64xf32, #tpu.memory_space<vmem>>, vector<1x1x64xf32>
    %15 = vector.shape_cast %14 : vector<1x1x64xf32> to vector<1x64xf32>
    %16 = vector.broadcast %15 : vector<1x64xf32> to vector<8x64xf32>
    %17 = arith.addf %13, %16 : vector<8x64xf32>
    %18 = vector.extract_strided_slice %17 {offsets = [0, 0], sizes = [8, 32], strides = [1, 1]} : vector<8x64xf32> to vector<8x32xf32>
    %19 = arith.negf %18 : vector<8x32xf32>
    %20 = math.exp %19 : vector<8x32xf32>
    %cst_20 = arith.constant 1.000000e+00 : f32
    %21 = vector.broadcast %cst_20 : f32 to vector<8x32xf32>
    %22 = arith.addf %21, %20 : vector<8x32xf32>
    %23 = arith.divf %21, %22 : vector<8x32xf32>
    %24 = vector.extract_strided_slice %23 {offsets = [0, 0], sizes = [8, 16], strides = [1, 1]} : vector<8x32xf32> to vector<8x16xf32>
    %25 = vector.extract_strided_slice %23 {offsets = [0, 16], sizes = [8, 16], strides = [1, 1]} : vector<8x32xf32> to vector<8x16xf32>
    %26 = vector.extract_strided_slice %17 {offsets = [0, 32], sizes = [8, 16], strides = [1, 1]} : vector<8x64xf32> to vector<8x16xf32>
    %27 = vector.extract_strided_slice %17 {offsets = [0, 48], sizes = [8, 16], strides = [1, 1]} : vector<8x64xf32> to vector<8x16xf32>
    %28 = arith.mulf %24, %27 : vector<8x16xf32>
    %29 = arith.addf %26, %28 : vector<8x16xf32>
    %30 = math.tanh %29 : vector<8x16xf32>
    %31 = arith.subf %4, %30 : vector<8x16xf32>
    %32 = arith.mulf %25, %31 : vector<8x16xf32>
    %33 = arith.addf %30, %32 : vector<8x16xf32>
    %c0_21 = arith.constant 0 : index
    %c0_22 = arith.constant 0 : index
    %c0_23 = arith.constant 0 : index
    %34 = vector.load %arg4[%c0_21, %c0_22, %c0_23] : memref<1x16x64xf32, #tpu.memory_space<vmem>>, vector<1x16x64xf32>
    %35 = vector.shape_cast %34 : vector<1x16x64xf32> to vector<16x64xf32>
    %cst_24 = arith.constant dense<0.000000e+00> : vector<8x64xf32>
    %36 = tpu.matmul %33, %35, %cst_24 {dimension_numbers = #tpu.dot_dimension_numbers<[1], [0], [0], [1], [0, 0, 1, 1], [], []>} : vector<8x16xf32>, vector<16x64xf32>, vector<8x64xf32> -> vector<8x64xf32>
    %c1_25 = arith.constant 1 : index
    %c0_26 = arith.constant 0 : index
    %c0_27 = arith.constant 0 : index
    %37 = vector.load %arg5[%c1_25, %c0_26, %c0_27] : memref<2x16x64xf32, #tpu.memory_space<vmem>>, vector<1x16x64xf32>
    %38 = vector.shape_cast %37 : vector<1x16x64xf32> to vector<16x64xf32>
    %cst_28 = arith.constant dense<0.000000e+00> : vector<8x64xf32>
    %39 = tpu.matmul %6, %38, %cst_28 {dimension_numbers = #tpu.dot_dimension_numbers<[1], [0], [0], [1], [0, 0, 1, 1], [], []>} : vector<8x16xf32>, vector<16x64xf32>, vector<8x64xf32> -> vector<8x64xf32>
    %40 = arith.addf %36, %39 : vector<8x64xf32>
    %c1_29 = arith.constant 1 : index
    %c0_30 = arith.constant 0 : index
    %c0_31 = arith.constant 0 : index
    %41 = vector.load %arg6[%c1_29, %c0_30, %c0_31] : memref<2x1x64xf32, #tpu.memory_space<vmem>>, vector<1x1x64xf32>
    %42 = vector.shape_cast %41 : vector<1x1x64xf32> to vector<1x64xf32>
    %43 = vector.broadcast %42 : vector<1x64xf32> to vector<8x64xf32>
    %44 = arith.addf %40, %43 : vector<8x64xf32>
    %45 = vector.extract_strided_slice %44 {offsets = [0, 0], sizes = [8, 32], strides = [1, 1]} : vector<8x64xf32> to vector<8x32xf32>
    %46 = arith.negf %45 : vector<8x32xf32>
    %47 = math.exp %46 : vector<8x32xf32>
    %cst_32 = arith.constant 1.000000e+00 : f32
    %48 = vector.broadcast %cst_32 : f32 to vector<8x32xf32>
    %49 = arith.addf %48, %47 : vector<8x32xf32>
    %50 = arith.divf %48, %49 : vector<8x32xf32>
    %51 = vector.extract_strided_slice %50 {offsets = [0, 0], sizes = [8, 16], strides = [1, 1]} : vector<8x32xf32> to vector<8x16xf32>
    %52 = vector.extract_strided_slice %50 {offsets = [0, 16], sizes = [8, 16], strides = [1, 1]} : vector<8x32xf32> to vector<8x16xf32>
    %53 = vector.extract_strided_slice %44 {offsets = [0, 32], sizes = [8, 16], strides = [1, 1]} : vector<8x64xf32> to vector<8x16xf32>
    %54 = vector.extract_strided_slice %44 {offsets = [0, 48], sizes = [8, 16], strides = [1, 1]} : vector<8x64xf32> to vector<8x16xf32>
    %55 = arith.mulf %51, %54 : vector<8x16xf32>
    %56 = arith.addf %53, %55 : vector<8x16xf32>
    %57 = math.tanh %56 : vector<8x16xf32>
    %58 = arith.subf %6, %57 : vector<8x16xf32>
    %59 = arith.mulf %52, %58 : vector<8x16xf32>
    %60 = arith.addf %57, %59 : vector<8x16xf32>
    %c0_33 = arith.constant 0 : index
    %c0_34 = arith.constant 0 : index
    %c0_35 = arith.constant 0 : index
    %61 = vector.load %arg9[%c0_33, %c0_34, %c0_35] : memref<1x8x16xf32, #tpu.memory_space<vmem>>, vector<1x8x16xf32>
    %62 = vector.shape_cast %61 : vector<1x8x16xf32> to vector<8x16xf32>
    %63 = vector.shape_cast %60 : vector<8x16xf32> to vector<1x8x16xf32>
    tpu.vector_store %arg9[%c0_33, %c0_34, %c0_35], %63 {strides = array<i32>} : memref<1x8x16xf32, #tpu.memory_space<vmem>>, vector<1x8x16xf32>,
    %cst_36 = arith.constant dense<0.000000e+00> : vector<8x4xf32>
    %64 = tpu.matmul %60, %1, %cst_36 {dimension_numbers = #tpu.dot_dimension_numbers<[1], [0], [0], [1], [0, 0, 1, 1], [], []>} : vector<8x16xf32>, vector<16x4xf32>, vector<8x4xf32> -> vector<8x4xf32>
    %65 = vector.broadcast %2 : vector<1x4xf32> to vector<8x4xf32>
    %66 = arith.addf %64, %65 : vector<8x4xf32>
    %cst_37 = arith.constant dense<0xFF800000> : vector<8xf32>
    %67 = vector.multi_reduction <maximumf>, %66, %cst_37 [1] : vector<8x4xf32> to vector<8xf32>
    %68 = vector.shape_cast %67 : vector<8xf32> to vector<8x1xf32>
    %69 = vector.broadcast %68 : vector<8x1xf32> to vector<8x4xf32>
    %70 = arith.subf %66, %69 : vector<8x4xf32>
    %71 = math.exp %70 : vector<8x4xf32>
    %cst_38 = arith.constant dense<0.000000e+00> : vector<8xf32>
    %72 = vector.multi_reduction <add>, %71, %cst_38 [1] : vector<8x4xf32> to vector<8xf32>
    %73 = vector.shape_cast %72 : vector<8xf32> to vector<8x1xf32>
    %74 = vector.broadcast %73 : vector<8x1xf32> to vector<8x4xf32>
    %75 = arith.divf %71, %74 : vector<8x4xf32>
    %c0_39 = arith.constant 0 : index
    %c0_40 = arith.constant 0 : index
    %c0_41 = arith.constant 0 : index
    %76 = vector.load %arg11[%c0_39, %c0_40, %c0_41] : memref<1x8x4xf32, #tpu.memory_space<vmem>>, vector<1x8x4xf32>
    %77 = vector.shape_cast %76 : vector<1x8x4xf32> to vector<8x4xf32>
    %78 = vector.shape_cast %75 : vector<8x4xf32> to vector<1x8x4xf32>
    tpu.vector_store %arg11[%c0_39, %c0_40, %c0_41], %78 {strides = array<i32>} : memref<1x8x4xf32, #tpu.memory_space<vmem>>, vector<1x8x4xf32>,
    %c0_42 = arith.constant 0 : index
    %c0_43 = arith.constant 0 : index
    %c0_44 = arith.constant 0 : index
    %79 = vector.load %arg10[%c0_42, %c0_43, %c0_44] : memref<2x8x16xf32, #tpu.memory_space<vmem>>, vector<1x8x16xf32>
    %80 = vector.shape_cast %79 : vector<1x8x16xf32> to vector<8x16xf32>
    %81 = vector.shape_cast %33 : vector<8x16xf32> to vector<1x8x16xf32>
    tpu.vector_store %arg10[%c0_42, %c0_43, %c0_44], %81 {strides = array<i32>} : memref<2x8x16xf32, #tpu.memory_space<vmem>>, vector<1x8x16xf32>,
    %c1_45 = arith.constant 1 : index
    %c0_46 = arith.constant 0 : index
    %c0_47 = arith.constant 0 : index
    %82 = vector.load %arg10[%c1_45, %c0_46, %c0_47] : memref<2x8x16xf32, #tpu.memory_space<vmem>>, vector<1x8x16xf32>
    %83 = vector.shape_cast %82 : vector<1x8x16xf32> to vector<8x16xf32>
    %84 = vector.shape_cast %60 : vector<8x16xf32> to vector<1x8x16xf32>
    tpu.vector_store %arg10[%c1_45, %c0_46, %c0_47], %84 {strides = array<i32>} : memref<2x8x16xf32, #tpu.memory_space<vmem>>, vector<1x8x16xf32>,
    return
  }
  func.func @transform_0(%arg0: i32) -> (i32, i32, i32) {
    %c0_i32 = arith.constant 0 : i32
    %c0_i32_0 = arith.constant 0 : i32
    %c0_i32_1 = arith.constant 0 : i32
    return %c0_i32, %arg0, %c0_i32_0 : i32, i32, i32
  }
  func.func @transform_1(%arg0: i32) -> (i32, i32, i32) {
    %c0_i32 = arith.constant 0 : i32
    %c0_i32_0 = arith.constant 0 : i32
    %c0_i32_1 = arith.constant 0 : i32
    return %c0_i32, %arg0, %c0_i32_0 : i32, i32, i32
  }
  func.func @transform_2(%arg0: i32) -> (i32, i32) {
    %c0_i32 = arith.constant 0 : i32
    %c0_i32_0 = arith.constant 0 : i32
    %c0_i32_1 = arith.constant 0 : i32
    return %c0_i32, %c0_i32_0 : i32, i32
  }
  func.func @transform_3(%arg0: i32) -> (i32, i32, i32) {
    %c0_i32 = arith.constant 0 : i32
    %c0_i32_0 = arith.constant 0 : i32
    %c0_i32_1 = arith.constant 0 : i32
    %c0_i32_2 = arith.constant 0 : i32
    return %c0_i32, %c0_i32_0, %c0_i32_1 : i32, i32, i32
  }
  func.func @transform_4(%arg0: i32) -> (i32, i32, i32) {
    %c0_i32 = arith.constant 0 : i32
    %c0_i32_0 = arith.constant 0 : i32
    %c0_i32_1 = arith.constant 0 : i32
    %c0_i32_2 = arith.constant 0 : i32
    return %c0_i32, %c0_i32_0, %c0_i32_1 : i32, i32, i32
  }
  func.func @transform_5(%arg0: i32) -> (i32, i32, i32) {
    %c0_i32 = arith.constant 0 : i32
    %c0_i32_0 = arith.constant 0 : i32
    %c0_i32_1 = arith.constant 0 : i32
    %c0_i32_2 = arith.constant 0 : i32
    return %c0_i32, %c0_i32_0, %c0_i32_1 : i32, i32, i32
  }
  func.func @transform_6(%arg0: i32) -> (i32, i32) {
    %c0_i32 = arith.constant 0 : i32
    %c0_i32_0 = arith.constant 0 : i32
    %c0_i32_1 = arith.constant 0 : i32
    return %c0_i32, %c0_i32_0 : i32, i32
  }
  func.func @transform_7(%arg0: i32) -> (i32, i32) {
    %c0_i32 = arith.constant 0 : i32
    %c0_i32_0 = arith.constant 0 : i32
    %c0_i32_1 = arith.constant 0 : i32
    return %c0_i32, %c0_i32_0 : i32, i32
  }
  func.func @transform_8(%arg0: i32) -> (i32, i32, i32) {
    %c0_i32 = arith.constant 0 : i32
    %c0_i32_0 = arith.constant 0 : i32
    %c0_i32_1 = arith.constant 0 : i32
    return %c0_i32, %arg0, %c0_i32_0 : i32, i32, i32
  }
  func.func @transform_9(%arg0: i32) -> (i32, i32, i32) {
    %c0_i32 = arith.constant 0 : i32
    %c0_i32_0 = arith.constant 0 : i32
    %c0_i32_1 = arith.constant 0 : i32
    return %c0_i32, %arg0, %c0_i32_0 : i32, i32, i32
  }
  func.func @transform_10(%arg0: i32) -> (i32, i32, i32) {
    %c0_i32 = arith.constant 0 : i32
    %c0_i32_0 = arith.constant 0 : i32
    %c0_i32_1 = arith.constant 0 : i32
    return %c0_i32, %arg0, %c0_i32_0 : i32, i32, i32
  }
}

</mosaic_0001>

<bundles_post_ra>
// kernel: tpu_custom_call.1
= control target key start
LH: loop header
LB: loop body
LE: loop exit
PB: predicated region body
PF: predicated region fallthrough
CT: control target
= control target key end

     0   :  { %16 = vsyncpa [#allocation3], 0  ;;  %s1074_s0 = inlined_call_operand.hbm [shape: f32[1,8,8], index: 0, kind: input, shape index: {}]   ;;  %s1075_s1 = inlined_call_operand.hbm [shape: f32[2,8,16], index: 1, kind: input, shape index: {}]   ;;  %s1076_s2 = inlined_call_operand.hbm [shape: f32[8,64], index: 2, kind: input, shape index: {}]   ;;  %s1077_s3 = inlined_call_operand.hbm [shape: f32[1,16,64], index: 3, kind: input, shape index: {}]   ;;  %s1078_s4 = inlined_call_operand.vmem [shape: f32[2,16,64], index: 4, kind: input, shape index: {}]   ;;  %s1079_s5 = inlined_call_operand.vmem [shape: f32[2,1,64], index: 5, kind: input, shape index: {}]   ;;  %s1080_s6 = inlined_call_operand.vmem [shape: f32[16,4], index: 6, kind: input, shape index: {}]   ;;  %s1081_s7 = inlined_call_operand.vmem [shape: f32[1,4], index: 7, kind: input, shape index: {}]   ;;  %s1082_s8 = inlined_call_operand.hbm [shape: f32[1,8,16], index: 8, kind: output, shape index: {0}]   ;;  %s1083_s9 = inlined_call_operand.hbm [shape: f32[2,8,16], index: 9, kind: output, shape index: {1}]   ;;  %s1084_s10 = inlined_call_operand.vmem [shape: f32[1,8,4], index: 10, kind: output, shape index: {2}]  }
   0x1   :  { %17 = vsyncpa [#allocation6], 0 }
   0x2   :  { %18 = vsyncpa [#allocation9], 0 }
   0x3   :  { %19 = vsyncpa [#allocation4], 0 }
   0x4   :  { %20 = vsyncpa [#allocation12], 0  ;;  %s859_s13 = smov [#allocation5]   ;;  %s717_s17 = scalar_lea.hbm %s1075_s1, 256 }
   0x5   :  { %s36_s14 = sshll.u32 %s859_s13, 4  ;;  %p718_p0 = scmp.ne.s32.totalorder %s1075_s1, %s717_s17  ;;  %s37_s14 = int_to_ptr.vmem [resolvable:$true] %s36_s14 }
   0x6   :  { %p721_p1 = scmp.lt.u32.totalorder %s717_s17, %s1075_s1 }
   0x8   :  { %p723_p2 = pnand %p721_p1, %p718_p0 }
   0xa   :  { %726 = shalt.err (!%p723_p2)
}
   0xb   :  { %s727_s22 = scalar_lea.vmem %s37_s14, 256  ;;  %p732_p4 = scmp.lt.s32.totalorder %s37_s14, %s37_s14 }
   0xc   :  { %p728_p3 = scmp.ne.s32.totalorder %s37_s14, %s727_s22  ;;  %p733_p5 = scmp.lt.s32.totalorder %s727_s22, %s727_s22 }
   0xe   :  { %p734_p6 = por %p733_p5, %p732_p4 }
  0x10   :  { %p735_p7 = pnand %p734_p6, %p728_p3 }
  0x12   :  { %738 = shalt.err (!%p735_p7)
}
  0x13   :  { %s860_s23 = smov 128   ;;  %s861_s24 = smov 8  }
  0x14   :  { %42 = dma.hbm_to_vmem [thread:$0]  %s1075_s1, 256, %s37_s14, [#allocation6], %s860_s23, %s860_s23, %s861_s24  }
  0x15   :  { %s862_s27 = smov [#allocation2]   ;;  %s863_s29 = smov [#allocation7]  }
  0x16   :  { %s27_s28 = sshll.u32 %s862_s27, 4  ;;  %s49_s30 = sshll.u32 %s863_s29, 4  ;;  %s28_s28 = int_to_ptr.vmem [resolvable:$true] %s27_s28  ;;  %s50_s30 = int_to_ptr.vmem [resolvable:$true] %s49_s30 }
  0x17   :  { %s739_s13 = scalar_lea.hbm %s1074_s0, 128 }
  0x18   :  { %p740_p8 = scmp.ne.s32.totalorder %s1074_s0, %s739_s13  ;;  %p743_p9 = scmp.lt.u32.totalorder %s739_s13, %s1074_s0 }
  0x1a   :  { %p745_p10 = pnand %p743_p9, %p740_p8 }
  0x1c   :  { %748 = shalt.err (!%p745_p10)
}
  0x1d   :  { %s749_s1 = scalar_lea.vmem %s28_s28, 128  ;;  %p754_p12 = scmp.lt.s32.totalorder %s28_s28, %s28_s28 }
  0x1e   :  { %p750_p11 = scmp.ne.s32.totalorder %s28_s28, %s749_s1  ;;  %p755_p13 = scmp.lt.s32.totalorder %s749_s1, %s749_s1 }
  0x20   :  { %p756_p0 = por %p755_p13, %p754_p12 }
  0x22   :  { %p757_p1 = pnand %p756_p0, %p750_p11 }
  0x24   :  { %760 = shalt.err (!%p757_p1)
}
  0x25   :  { %30 = dma.hbm_to_vmem [thread:$0]  %s1074_s0, 128, %s28_s28, [#allocation3]  }
  0x26   :  { %s761_s22 = scalar_lea.hbm %s1076_s2, 128 }
  0x27   :  { %p762_p2 = scmp.ne.s32.totalorder %s1076_s2, %s761_s22  ;;  %p765_p3 = scmp.lt.u32.totalorder %s761_s22, %s1076_s2 }
  0x29   :  { %p767_p4 = pnand %p765_p3, %p762_p2 }
  0x2b   :  { %770 = shalt.err (!%p767_p4)
}
  0x2c   :  { %s771_s11 = scalar_lea.vmem %s50_s30, 128  ;;  %p776_p6 = scmp.lt.s32.totalorder %s50_s30, %s50_s30 }
  0x2d   :  { %p772_p5 = scmp.ne.s32.totalorder %s50_s30, %s771_s11  ;;  %p777_p7 = scmp.lt.s32.totalorder %s771_s11, %s771_s11 }
  0x2f   :  { %p778_p8 = por %p777_p7, %p776_p6 }
  0x31   :  { %p779_p9 = pnand %p778_p8, %p772_p5 }
  0x33   :  { %782 = shalt.err (!%p779_p9)
}
  0x34   :  { %52 = dma.hbm_to_vmem [thread:$0]  %s1076_s2, 128, %s50_s30, [#allocation6]  }
  0x35   :  { %s864_s12 = smov [#allocation8]   ;;  %s783_s17 = scalar_lea.hbm %s1077_s3, 256 }
  0x36   :  { %s58_s13 = sshll.u32 %s864_s12, 4  ;;  %p784_p10 = scmp.ne.s32.totalorder %s1077_s3, %s783_s17  ;;  %s59_s13 = int_to_ptr.vmem [resolvable:$true] %s58_s13 }
  0x37   :  { %p787_p11 = scmp.lt.u32.totalorder %s783_s17, %s1077_s3 }
  0x39   :  { %p789_p12 = pnand %p787_p11, %p784_p10 }
  0x3b   :  { %792 = shalt.err (!%p789_p12)
}
  0x3c   :  { %s793_s20 = scalar_lea.vmem %s59_s13, 256  ;;  %p798_p0 = scmp.lt.s32.totalorder %s59_s13, %s59_s13 }
  0x3d   :  { %p794_p13 = scmp.ne.s32.totalorder %s59_s13, %s793_s20  ;;  %p799_p1 = scmp.lt.s32.totalorder %s793_s20, %s793_s20 }
  0x3f   :  { %p800_p2 = por %p799_p1, %p798_p0 }
  0x41   :  { %p801_p3 = pnand %p800_p2, %p794_p13 }
  0x43   :  { %804 = shalt.err (!%p801_p3)
}
  0x44   :  { %64 = dma.hbm_to_vmem [thread:$0]  %s1077_s3, 256, %s59_s13, [#allocation9], %s860_s23, %s860_s23, %s861_s24  }
  0x45   :  { %849 = dma.done.wait [#allocation3], 128  }
  0x46   :  { %850 = vsyncadd [#allocation3], 4294967168 }
  0x47   :  { %851 = dma.done.wait [#allocation6], 384  }
  0x48   :  { %852 = vsyncadd [#allocation6], 4294966912 }
  0x49   :  { %853 = dma.done.wait [#allocation9], 256  }
  0x4a   :  { %854 = vsyncadd [#allocation9], 4294967040  ;;  %v865_v0 = vmov 0.0|0.0   ;;  %v866_v1 = vmov 0.0   ;;  %vm867_vm0 = vmmov 0   ;;  %vm169_vm1 = vcmask 64512  }
  0x4b   :  { %674 = vmatprep.subr.bf16.mxu0 %v865_v0  ;;  %648 = vmatprep.subr.mxu1 %v866_v1  ;;  %v93_v2 = vld [vmem:[%s1078_s4] sm:$0xff]  ;;  %v94_v3 = vld [vmem:[%s1078_s4 + $0x8] sm:$0xff]  ;;  %v85_v4 = vld [vmem:[#allocation7] sm:$0xff]  ;;  %vm95_vm2 = vcmask 130048   ;;  %s868_s29 = smov 80   ;;  %s869_s11 = smov 32  }
  0x4c   :  { %650 = vmatprep.mubr.msk.f32.mxu1 %vm867_vm0, %v866_v1  ;;  %645 = vmatprep.mubr.msk.f32.mxu0 %vm867_vm0, %v866_v1  ;;  %v675_v5 = vpack.c.bf16 %v94_v3, %v93_v2  ;;  %v92_v6 = vld [vmem:[#allocation2] sm:$0xff]  ;;  %v89_v7 = vld [vmem:[#allocation5] sm:$0xff]  ;;  %s870_s0 = smov 96   ;;  %s871_s28 = smov 16   ;;  %v618_v26 = vld [vmem:[%s1078_s4 + $0x10] sm:$0xff]  ;;  %vm560_vm3 = vcmask 31744  }
  0x4d   :  { %649 = vmatpush3.msra.mxu1 %v85_v4  ;;  %v616_v11 = vld [vmem:[%s1079_s5] ss:$0 sm:$0xff]  ;;  %v619_v27 = vld [vmem:[%s1078_s4 + $0x18] sm:$0xff]  ;;  %v284_v30 = vld [vmem:[#allocation8 + $0x8] sm:$0xff]  ;;  %s873_s30 = smov [#allocation11]  }
  0x4e   :  { %651 = vmatmul.mubr.msk.f32.vlgmr.msra.gmra.mrb[0].mxu1 %vm169_vm1, %v92_v6  ;;  %677 = vmatprep.subr.bf16.mxu1 %v865_v0  ;;  %v283_v28 = vld [vmem:[#allocation8] sm:$0xff]  ;;  %v678_v29 = vpack.c.bf16 %v619_v27, %v618_v26  ;;  %v91_v32 = vld [vmem:[#allocation5 + $0x8] sm:$0xff]  ;;  %v87_v57 = vld [vmem:[%s1080_s6 + $0x8] sm:$0xff]  ;;  %s592_s21 = sshll.u32 %s873_s30, 4  ;;  %s1036_s21 = int_to_ptr.vmem [resolvable:$true] %s592_s21 }
  0x4f   :  { %676 = vmatpush3.bf16.msra.mxu0 %v675_v5  ;;  %657 = vmatprep.mubr.msk.f32.mxu1 %vm867_vm0, %v866_v1  ;;  %v681_v31 = vpack.c.bf16 %v284_v30, %v283_v28  ;;  %v623_v41 = vld [vmem:[%s1079_s5 + $0x1] ss:$0 sm:$0xff] }
  0x50   :  { %680 = vmatprep.subr.bf16.mxu0 %v865_v0  ;;  %679 = vmatpush3.bf16.msra.mxu1 %v678_v29  ;;  %v86_v56 = vld [vmem:[%s1080_s6] sm:$0xff]  ;;  %s872_s6 = smov [#allocation10]  }
  0x51   :  { %683 = vmatprep.subr.bf16.mxu1 %v865_v0  ;;  %v684_v58 = vpack.c.bf16 %v87_v57, %v86_v56  ;;  %v625_v0 = vld [vmem:[%s1081_s7] ss:$0 sm:$0xff]  ;;  %s583_s2 = sshll.u32 %s872_s6, 4  ;;  %s584_s2 = int_to_ptr.vmem [resolvable:$true] %s583_s2 }
  0x52   :  { %646 = vmatmul.mubr.msk.f32.vlgmr.msra.gmra.mrb[0].mxu0 %vm95_vm2, %v89_v7  ;;  %s805_s7 = scalar_lea.vmem %s584_s2, 128  ;;  %p810_p5 = scmp.lt.s32.totalorder %s584_s2, %s584_s2 }
  0x53   :  { %664 = vmatprep.mubr.msk.f32.mxu0 %vm867_vm0, %v866_v1  ;;  %682 = vmatpush3.bf16.msra.mxu0 %v681_v31  ;;  %p806_p4 = scmp.ne.s32.totalorder %s584_s2, %s805_s7  ;;  %p811_p6 = scmp.lt.s32.totalorder %s805_s7, %s805_s7 }
  0x54   :  { %658 = vmatmul.mubr.msk.f32.vlgmr.msra.gmra.mrb[2].mxu1 %vm95_vm2, %v91_v32 }
  0x55   :  { %671 = vmatprep.mubr.msk.f32.mxu1 %vm867_vm0, %v866_v1  ;;  %685 = vmatpush3.bf16.msra.mxu1 %v684_v58  ;;  %p812_p7 = por %p811_p6, %p810_p5 }
  0x57   :  { %p813_p8 = pnand %p812_p7, %p806_p4 }
 0x121   :  { %v239_v8 = vpop.f32.mrb[0].mxu1 }
 0x122   :  { %v652_v9 = vpop.f32.mrb[1].mxu1 }
 0x125   :  { %v165_v10 = vpop.f32.mrb[0].mxu0 }
 0x126   :  { %v240_v12 = vadd.f32 %v239_v8, %v165_v10  ;;  %v647_v13 = vpop.f32.mrb[1].mxu0 }
 0x127   :  { %v357_v37 = vpop.f32.mrb[2].mxu1 }
 0x128   :  { %v250_v14 = vadd.f32 %v616_v11, %v240_v12  ;;  %v659_v38 = vpop.f32.mrb[3].mxu1 }
 0x12a   :  { %258 = vrot.lane.b32.xlu0 %v250_v14, %s868_s29  ;;  %v617_v15 = vmul.f32 -1.442695, %v250_v14 }
 0x12c   :  { %701 = vpow2.f32 %v617_v15 }
 0x136   :  { %v702_v16 = vpop.eup %701 }
 0x137   :  { %v254_v17 = vadd.f32 1.0, %v702_v16 }
 0x139   :  { %703 = vrcp.f32 %v254_v17 }
 0x143   :  { %v704_v18 = vpop.eup %703 }
 0x19c   :  { %v259_v19 = vpop.permute.xlu0 %258 }
 0x19d   :  { %v261_v20 = vmul.f32 %v704_v18, %v259_v19 }
 0x19f   :  { %263 = vrot.lane.b32.xlu0 %v261_v20, %s869_s11 }
 0x211   :  { %v264_v21 = vpop.permute.xlu0 %263 }
 0x212   :  { %v266_v22 = vadd.f32 %v264_v21, %v250_v14 }
 0x214   :  { %705 = vtanh.f32 %v266_v22 }
 0x21e   :  { %v706_v23 = vpop.eup %705 }
 0x21f   :  { %269 = vrot.lane.b32.xlu1 %v706_v23, %s870_s0 }
 0x291   :  { %v270_v24 = vpop.permute.xlu1 %269 }
 0x292   :  { %v272_v25 = vsub.f32 %v89_v7, %v270_v24 }
 0x294   :  { %274 = vrot.lane.b32.xlu1 %v272_v25, %s871_s28 }
 0x306   :  { %v275_v33 = vpop.permute.xlu1 %274 }
 0x307   :  { %v277_v34 = vmul.f32 %v704_v18, %v275_v33 }
 0x309   :  { %279 = vrot.lane.b32.xlu0 %v277_v34, %s871_s28 }
 0x37b   :  { %v280_v35 = vpop.permute.xlu0 %279 }
 0x37c   :  { %v282_v36 = vadd.f32 %v706_v23, %v280_v35 }
 0x37e   :  { %362 = vrot.lane.b32.xlu1 %v282_v36, %s870_s0 }
 0x3f0   :  { %v363_v39 = vpop.permute.xlu1 %362 }
 0x3f1   :  { %574 = vst.msk [vmem:[#allocation11] sm:$0xff] %vm95_vm2, %v363_v39  ;;  %665 = vmatmul.mubr.msk.f32.vlgmr.msra.gmra.mrb[2].mxu0 %vm95_vm2, %v363_v39 }
 0x4c4   :  { %v432_v40 = vpop.f32.mrb[2].mxu0 }
 0x4c5   :  { %v433_v42 = vadd.f32 %v432_v40, %v357_v37  ;;  %v666_v43 = vpop.f32.mrb[3].mxu0 }
 0x4c7   :  { %v444_v44 = vadd.f32 %v623_v41, %v433_v42 }
 0x4c9   :  { %452 = vrot.lane.b32.xlu0 %v444_v44, %s868_s29  ;;  %v624_v45 = vmul.f32 -1.442695, %v444_v44 }
 0x4cb   :  { %707 = vpow2.f32 %v624_v45 }
 0x4d5   :  { %v708_v46 = vpop.eup %707 }
 0x4d6   :  { %v448_v47 = vadd.f32 1.0, %v708_v46 }
 0x4d8   :  { %709 = vrcp.f32 %v448_v47 }
 0x4e2   :  { %v710_v48 = vpop.eup %709 }
 0x53b   :  { %v453_v49 = vpop.permute.xlu0 %452 }
 0x53c   :  { %v455_v50 = vmul.f32 %v710_v48, %v453_v49 }
 0x53e   :  { %457 = vrot.lane.b32.xlu1 %v455_v50, %s869_s11 }
 0x5b0   :  { %v458_v51 = vpop.permute.xlu1 %457 }
 0x5b1   :  { %v460_v52 = vadd.f32 %v458_v51, %v444_v44 }
 0x5b3   :  { %711 = vtanh.f32 %v460_v52 }
 0x5bd   :  { %v712_v53 = vpop.eup %711 }
 0x5be   :  { %463 = vrot.lane.b32.xlu0 %v712_v53, %s870_s0 }
 0x630   :  { %v464_v54 = vpop.permute.xlu0 %463 }
 0x631   :  { %v466_v55 = vsub.f32 %v91_v32, %v464_v54 }
 0x633   :  { %468 = vrot.lane.b32.xlu1 %v466_v55, %s871_s28 }
 0x6a5   :  { %v469_v59 = vpop.permute.xlu1 %468 }
 0x6a6   :  { %v471_v60 = vmul.f32 %v710_v48, %v469_v59 }
 0x6a8   :  { %473 = vrot.lane.b32.xlu0 %v471_v60, %s871_s28 }
 0x71a   :  { %v474_v61 = vpop.permute.xlu0 %473 }
 0x71b   :  { %v476_v62 = vadd.f32 %v712_v53, %v474_v61 }
 0x71d   :  { %478 = vrot.lane.b32.xlu1 %v476_v62, %s870_s0 }
 0x78f   :  { %v479_v63 = vpop.permute.xlu1 %478 }
 0x790   :  { %481 = vst.msk [vmem:[#allocation10] sm:$0xff] %vm95_vm2, %v479_v63  ;;  %576 = vst.msk [vmem:[#allocation11 + $0x8] sm:$0xff] %vm95_vm2, %v479_v63  ;;  %672 = vmatmul.mubr.msk.f32.vlgmr.msra.gmra.mrb[4].mxu1 %vm95_vm2, %v479_v63 }
 0x863   :  { %v556_v1 = vpop.f32.mrb[4].mxu1 }
 0x864   :  { %v557_v2 = vadd.f32 %v625_v0, %v556_v1  ;;  %v673_v3 = vpop.f32.mrb[5].mxu1 }
 0x866   :  { %v561_v4 = vsel %vm560_vm3, %v557_v2, -inf }
 0x867   :  { %562 = vmax.xlane.f32.xlu0 %v561_v4 }
 0x8f4   :  { %v563_v5 = vpop.xlane.xlu0 %562 }
 0x8f5   :  { %v564_v6 = vsub.f32 %v557_v2, %v563_v5 }
 0x8f7   :  { %v565_v7 = vmul.f32 1.442695, %v564_v6 }
 0x8f9   :  { %713 = vpow2.f32 %v565_v7 }
 0x903   :  { %v714_v8 = vpop.eup %713 }
 0x904   :  { %v567_v9 = vsel %vm560_vm3, %v714_v8, 0.0 }
 0x905   :  { %568 = vadd.xlane.f32.xlu1 %v567_v9 }
 0x906   :  { %816 = shalt.err (!%p813_p8)
}
 0x907   :  { %s817_s25 = scalar_lea.hbm %s1082_s8, 128 }
 0x908   :  { %p818_p9 = scmp.ne.s32.totalorder %s1082_s8, %s817_s25  ;;  %p821_p10 = scmp.lt.u32.totalorder %s817_s25, %s1082_s8 }
 0x90a   :  { %p823_p11 = pnand %p821_p10, %p818_p9 }
 0x90c   :  { %826 = shalt.err (!%p823_p11)
}
 0x90d   :  { %586 = dma.vmem_to_hbm [thread:$0]  %s584_s2, 128, %s1082_s8, [#allocation4]  }
 0x90e   :  { %s827_s12 = scalar_lea.vmem %s1036_s21, 256  ;;  %p832_p13 = scmp.lt.s32.totalorder %s1036_s21, %s1036_s21 }
 0x90f   :  { %p828_p12 = scmp.ne.s32.totalorder %s1036_s21, %s827_s12  ;;  %p833_p0 = scmp.lt.s32.totalorder %s827_s12, %s827_s12 }
 0x911   :  { %p834_p1 = por %p833_p0, %p832_p13 }
 0x913   :  { %p835_p2 = pnand %p834_p1, %p828_p12 }
 0x915   :  { %838 = shalt.err (!%p835_p2)
}
 0x916   :  { %s839_s16 = scalar_lea.hbm %s1083_s9, 256 }
 0x917   :  { %p840_p3 = scmp.ne.s32.totalorder %s1083_s9, %s839_s16  ;;  %p843_p4 = scmp.lt.u32.totalorder %s839_s16, %s1083_s9 }
 0x919   :  { %p845_p5 = pnand %p843_p4, %p840_p3 }
 0x91b   :  { %848 = shalt.err (!%p845_p5)
}
 0x91c   :  { %598 = dma.vmem_to_hbm [thread:$0]  %s1036_s21, 256, %s1083_s9, [#allocation12], %s860_s23, %s860_s23, %s861_s24  }
 0x992   :  { %v569_v10 = vpop.xlane.xlu1 %568 }
 0x993   :  { %715 = vrcp.f32 %v569_v10 }
 0x99d   :  { %v716_v11 = vpop.eup %715 }
 0x99e   :  { %v571_v12 = vmul.f32 %v716_v11, %v714_v8 }
 0x9a0   :  { %572 = vst.msk [vmem:[%s1084_s10] sm:$0xff] %vm560_vm3, %v571_v12 }
 0x9a1   :  { %855 = dma.done.wait [#allocation4], 128  }
 0x9a2   :  { %856 = vsyncadd [#allocation4], 4294967168 }
 0x9a3   :  { %857 = dma.done.wait [#allocation12], 256  }
 0x9a4   :  { %858 = vsyncadd [#allocation12], 4294967040 }
 0x9a5   :  { %609 = vsyncpa [#allocation3], 1 }
 0x9a6   :  { %610 = vsyncpa [#allocation6], 1 }
 0x9a7   :  { %611 = vsyncpa [#allocation9], 1 }
 0x9a8   :  { %612 = vsyncpa [#allocation4], 1 }
 0x9a9   :  { %613 = vsyncpa [#allocation12], 1 }

</bundles_post_ra>
